<compile_context>
chip_gen: v6e
topology: v6e:2x2x1
jax: 0.10.0
libtpu: 0.0.40
codegen_flags: <defaults>
</compile_context>

<pallas_src>
import math

import jax
import jax.numpy as jnp
from jax.experimental import pallas as pl
from jax.experimental.pallas import tpu as pltpu


def _round_up(a, b):
    return ((a + b - 1) // b) * b


def _pick_tile(padded_dim, pref, align):
    """Largest multiple of `align` that divides `padded_dim` and is <= pref."""
    pref = max(align, min(pref, padded_dim))
    pref -= pref % align
    for t in range(pref, align - 1, -align):
        if padded_dim % t == 0:
            return t
    return align


def _cosine_linear_kernel(x_ref, w_ref, invx_ref, invw_ref, o_ref, acc_ref):
    # x_ref:    VMEM (tm, tk)  bf16 input tile
    # w_ref:    VMEM (tn, tk)  bf16 weight tile
    # invx_ref: VMEM (tm, 1)   f32  1 / ||x_row||        (precomputed)
    # invw_ref: VMEM (1, tn)   f32  sigma / ||w_row||    (precomputed)
    # o_ref:    VMEM (tm, tn)  output tile (written at the last K step only)
    # acc_ref:  VMEM (tm, tn)  f32 raw-dot accumulator
    k = pl.program_id(2)

    @pl.when(k == 0)
    def _init():
        acc_ref[...] = jnp.zeros_like(acc_ref)

    # Raw (un-normalized) dot product: bf16 MXU operands, f32 accumulation.
    acc_ref[...] += jax.lax.dot_general(
        x_ref[...], w_ref[...],
        dimension_numbers=(((1,), (1,)), ((), ())),
        preferred_element_type=jnp.float32)

    @pl.when(k == pl.num_programs(2) - 1)
    def _finalize():
        # sigma is pre-folded into invw -> two broadcast multiplies, not three.
        o_ref[...] = (acc_ref[...] * invx_ref[...]
                      * invw_ref[...]).astype(o_ref.dtype)


def cosine_linear(x, weight, sigma=None, *, tm=256, tn=512, tk=1024,
                  compute_dtype=jnp.bfloat16):
    """out = sigma * normalize(x, dim=1) @ normalize(weight, dim=1).T

    x: [B, in_features], weight: [out_features, in_features], sigma: scalar
    (or None, matching the module's sigma=False path).
    """
    B, In = x.shape
    Out, In_w = weight.shape
    assert In_w == In
    out_dtype = x.dtype

    # ---- Hoisted normalization (one cheap mem-bound pass per operand). ----
    # max(||v||, 1e-12) == sqrt(max(sum v^2, 1e-24)) -> matches F.normalize.
    eps_sq = jnp.float32(1e-24)
    x32 = x.astype(jnp.float32)
    w32 = weight.astype(jnp.float32)
    inv_x = jax.lax.rsqrt(
        jnp.maximum(jnp.sum(x32 * x32, axis=1, keepdims=True), eps_sq))    # (B, 1)
    inv_w = jax.lax.rsqrt(
        jnp.maximum(jnp.sum(w32 * w32, axis=1, keepdims=True), eps_sq)).T  # (1, Out)
    sig = (jnp.float32(1.0) if sigma is None
           else jnp.asarray(sigma, jnp.float32).reshape(()))
    inv_w = sig * inv_w  # fold sigma into the per-output-row scale

    # ---- Tile / padding selection. ----
    m_align = 16 if jnp.dtype(compute_dtype).itemsize < 4 else 8
    Bp = _round_up(B, m_align)
    Op = _round_up(Out, 128)
    Ip = _round_up(In, 128)
    tm = _pick_tile(Bp, tm, m_align)
    tn = _pick_tile(Op, tn, 128)
    tk = _pick_tile(Ip, tk, 128)
    # v7x megacore: if the batch fits a single M block, split N across >= 2
    # parallel blocks so both TensorCores get work.
    if Bp // tm == 1 and Op // tn < 2 and Op >= 256:
        tn = _pick_tile(Op, Op // 2, 128)

    # ---- bf16 cast fused with the (<= one alignment unit) zero pad. ----
    def _prep(a, rows, cols, rp, cp, dtype):
        a = a.astype(dtype)
        if (rp, cp) != (rows, cols):
            a = jnp.pad(a, ((0, rp - rows), (0, cp - cols)))
        return a

    xp = _prep(x, B, In, Bp, Ip, compute_dtype)
    wp = _prep(weight, Out, In, Op, Ip, compute_dtype)
    invx_p = _prep(inv_x, B, 1, Bp, 1, jnp.float32)
    invw_p = _prep(inv_w, 1, Out, 1, Op, jnp.float32)

    grid = (Bp // tm, Op // tn, Ip // tk)

    cbytes = jnp.dtype(compute_dtype).itemsize
    cost = pl.CostEstimate(
        flops=2 * Bp * Op * Ip + 2 * Bp * Op,
        transcendentals=0,
        bytes_accessed=cbytes * (Bp * Ip + Op * Ip)
        + 4 * (Bp + Op) + jnp.dtype(out_dtype).itemsize * Bp * Op,
    )

    # TODO(synk): if `weight` is reused across calls (inference), pre-normalize
    # it to bf16 once offline so only the x-side prep remains per call.
    # TODO(synk): if the small-batch (GEMV-like) regime remains DMA-exposed,
    # sweep pipeline_mode=pl.Buffered(2..4) on the W BlockSpec.
    out_padded = pl.pallas_call(
        _cosine_linear_kernel,
        out_shape=jax.ShapeDtypeStruct((Bp, Op), out_dtype),
        grid_spec=pltpu.PrefetchScalarGridSpec(
            num_scalar_prefetch=0,
            grid=grid,
            in_specs=[
                pl.BlockSpec((tm, tk), lambda i, j, k: (i, k)),   # x tile (bf16)
                pl.BlockSpec((tn, tk), lambda i, j, k: (j, k)),   # W tile (bf16)
                pl.BlockSpec((tm, 1), lambda i, j, k: (i, 0)),    # 1/||x||  (f32)
                pl.BlockSpec((1, tn), lambda i, j, k: (0, j)),    # sigma/||w||
            ],
            out_specs=pl.BlockSpec((tm, tn), lambda i, j, k: (i, j)),
            scratch_shapes=[pltpu.VMEM((tm, tn), jnp.float32)],   # accumulator
        ),
        compiler_params=pltpu.CompilerParams(
            dimension_semantics=("parallel", "parallel", "arbitrary")),
        cost_estimate=cost,
    )(xp, wp, invx_p, invw_p)

    return out_padded[:B, :Out]


def cosine_linear_reference(x, weight, sigma):
    """Pure-JAX reference mirroring the PyTorch forward."""
    eps = 1e-12
    xn = x / jnp.maximum(jnp.linalg.norm(x, axis=1, keepdims=True), eps)
    wn = weight / jnp.maximum(jnp.linalg.norm(weight, axis=1, keepdims=True), eps)
    out = xn @ wn.T
    return out if sigma is None else sigma * out


if __name__ == "__main__":
    key = jax.random.PRNGKey(0)

    def check(B, in_features, out_features, **tiles):
        k_x, k_w = jax.random.split(
            jax.random.fold_in(key, B * 10000 + in_features))
        x = jax.random.normal(k_x, (B, in_features), dtype=jnp.float32)
        # reset_parameters(): weight ~ U(-stdv, stdv), stdv = 1/sqrt(in); sigma = 1.
        stdv = 1.0 / math.sqrt(in_features)
        weight = jax.random.uniform(
            k_w, (out_features, in_features), dtype=jnp.float32,
            minval=-stdv, maxval=stdv)
        sigma = jnp.float32(1.0)

        out = jax.block_until_ready(cosine_linear(x, weight, sigma, **tiles))
        ref = cosine_linear_reference(x, weight, sigma)

        assert out.shape == (B, out_features)
        # bf16 MXU operands with f32 accumulation -> slightly loose tolerance.
        max_err = float(jnp.max(jnp.abs(out - ref)))
        assert jnp.allclose(out, ref, atol=2e-2, rtol=2e-2), (
            f"mismatch vs reference ({B},{in_features},{out_features}): "
            f"max abs err {max_err:.3e}")

    # Small shape consistent with the module: batch=8, in=32, out=16.
    check(8, 32, 16)
    # Multi-block grid (M=2, N=2, K=3) to exercise init / accumulate / finalize.
    check(32, 384, 256, tm=16, tn=128, tk=128)

    print("KERNEL_OK")
</pallas_src>

<mosaic_0001>
module attributes {stable_mosaic.version = 11 : i64} {
  func.func @_cosine_linear_kernel(%arg0: i32, %arg1: i32, %arg2: i32, %arg3: memref<16x128xbf16, #tpu.memory_space<vmem>>, %arg4: memref<128x128xbf16, #tpu.memory_space<vmem>>, %arg5: memref<16x1xf32, #tpu.memory_space<vmem>>, %arg6: memref<1x128xf32, #tpu.memory_space<vmem>>, %arg7: memref<16x128xf32, #tpu.memory_space<vmem>>, %arg8: memref<16x128xf32, #tpu.memory_space<vmem>>) attributes {dimension_semantics = [#tpu.dimension_semantics<parallel>, #tpu.dimension_semantics<parallel>, #tpu.dimension_semantics<arbitrary>], iteration_bounds = array<i64: 1, 1, 1>, scalar_prefetch = 0 : i64, scratch_operands = 1 : i64, tpu.core_type = #tpu.core_type<tc>, window_params = [{transform_indices = @transform_0, window_bounds = array<i64: 16, 128>}, {transform_indices = @transform_1, window_bounds = array<i64: 128, 128>}, {transform_indices = @transform_2, window_bounds = array<i64: 16, 1>}, {transform_indices = @transform_3, window_bounds = array<i64: 1, 128>}, {transform_indices = @transform_4, window_bounds = array<i64: 16, 128>}]} {
    %c0_i32 = arith.constant 0 : i32
    %0 = arith.cmpi eq, %arg2, %c0_i32 : i32
    %1 = arith.extui %0 : i1 to i32
    %c0_i32_0 = arith.constant 0 : i32
    %2 = arith.cmpi ne, %1, %c0_i32_0 : i32
    scf.if %2 {
      %cst_10 = arith.constant 0.000000e+00 : f32
      %12 = vector.broadcast %cst_10 : f32 to vector<16x128xf32>
      %c0_11 = arith.constant 0 : index
      %c0_12 = arith.constant 0 : index
      %13 = vector.load %arg8[%c0_11, %c0_12] : memref<16x128xf32, #tpu.memory_space<vmem>>, vector<16x128xf32>
      tpu.vector_store %arg8[%c0_11, %c0_12], %12 {strides = array<i32>} : memref<16x128xf32, #tpu.memory_space<vmem>>, vector<16x128xf32>,
    } else {
    }
    %c0 = arith.constant 0 : index
    %c0_1 = arith.constant 0 : index
    %3 = vector.load %arg8[%c0, %c0_1] : memref<16x128xf32, #tpu.memory_space<vmem>>, vector<16x128xf32>
    %c0_2 = arith.constant 0 : index
    %c0_3 = arith.constant 0 : index
    %4 = vector.load %arg3[%c0_2, %c0_3] : memref<16x128xbf16, #tpu.memory_space<vmem>>, vector<16x128xbf16>
    %c0_4 = arith.constant 0 : index
    %c0_5 = arith.constant 0 : index
    %5 = vector.load %arg4[%c0_4, %c0_5] : memref<128x128xbf16, #tpu.memory_space<vmem>>, vector<128x128xbf16>
    %cst = arith.constant dense<0.000000e+00> : vector<16x128xf32>
    %6 = tpu.matmul %4, %5, %cst {dimension_numbers = #tpu.dot_dimension_numbers<[1], [1], [0], [0], [0, 0, 1, 0], [], []>} : vector<16x128xbf16>, vector<128x128xbf16>, vector<16x128xf32> -> vector<16x128xf32>
    %7 = arith.addf %3, %6 : vector<16x128xf32>
    %c0_6 = arith.constant 0 : index
    %c0_7 = arith.constant 0 : index
    %8 = vector.load %arg8[%c0_6, %c0_7] : memref<16x128xf32, #tpu.memory_space<vmem>>, vector<16x128xf32>
    tpu.vector_store %arg8[%c0_6, %c0_7], %7 {strides = array<i32>} : memref<16x128xf32, #tpu.memory_space<vmem>>, vector<16x128xf32>,
    %c0_i32_8 = arith.constant 0 : i32
    %9 = arith.cmpi eq, %arg2, %c0_i32_8 : i32
    %10 = arith.extui %9 : i1 to i32
    %c0_i32_9 = arith.constant 0 : i32
    %11 = arith.cmpi ne, %10, %c0_i32_9 : i32
    scf.if %11 {
      %c0_10 = arith.constant 0 : index
      %c0_11 = arith.constant 0 : index
      %12 = vector.load %arg8[%c0_10, %c0_11] : memref<16x128xf32, #tpu.memory_space<vmem>>, vector<16x128xf32>
      %c0_12 = arith.constant 0 : index
      %c0_13 = arith.constant 0 : index
      %13 = vector.load %arg5[%c0_12, %c0_13] : memref<16x1xf32, #tpu.memory_space<vmem>>, vector<16x1xf32>
      %14 = vector.broadcast %13 : vector<16x1xf32> to vector<16x128xf32>
      %15 = arith.mulf %12, %14 : vector<16x128xf32>
      %c0_14 = arith.constant 0 : index
      %c0_15 = arith.constant 0 : index
      %16 = vector.load %arg6[%c0_14, %c0_15] : memref<1x128xf32, #tpu.memory_space<vmem>>, vector<1x128xf32>
      %17 = vector.broadcast %16 : vector<1x128xf32> to vector<16x128xf32>
      %18 = arith.mulf %15, %17 : vector<16x128xf32>
      %c0_16 = arith.constant 0 : index
      %c0_17 = arith.constant 0 : index
      %19 = vector.load %arg7[%c0_16, %c0_17] : memref<16x128xf32, #tpu.memory_space<vmem>>, vector<16x128xf32>
      tpu.vector_store %arg7[%c0_16, %c0_17], %18 {strides = array<i32>} : memref<16x128xf32, #tpu.memory_space<vmem>>, vector<16x128xf32>,
    } else {
    }
    return
  }
  func.func @transform_0(%arg0: i32, %arg1: i32, %arg2: i32) -> (i32, i32) {
    %c0_i32 = arith.constant 0 : i32
    return %arg0, %arg2 : i32, i32
  }
  func.func @transform_1(%arg0: i32, %arg1: i32, %arg2: i32) -> (i32, i32) {
    %c0_i32 = arith.constant 0 : i32
    return %arg1, %arg2 : i32, i32
  }
  func.func @transform_2(%arg0: i32, %arg1: i32, %arg2: i32) -> (i32, i32) {
    %c0_i32 = arith.constant 0 : i32
    %c0_i32_0 = arith.constant 0 : i32
    return %arg0, %c0_i32 : i32, i32
  }
  func.func @transform_3(%arg0: i32, %arg1: i32, %arg2: i32) -> (i32, i32) {
    %c0_i32 = arith.constant 0 : i32
    %c0_i32_0 = arith.constant 0 : i32
    return %c0_i32, %arg1 : i32, i32
  }
  func.func @transform_4(%arg0: i32, %arg1: i32, %arg2: i32) -> (i32, i32) {
    %c0_i32 = arith.constant 0 : i32
    return %arg0, %arg1 : i32, i32
  }
}

</mosaic_0001>

<bundles_post_ra>
// kernel: tpu_custom_call.1
= control target key start
LH: loop header
LB: loop body
LE: loop exit
PB: predicated region body
PF: predicated region fallthrough
CT: control target
= control target key end

     0   :  { %9 = vsyncpa [#allocation4], 0  ;;  %s359_s0 = inlined_call_operand.vmem [shape: bf16[16,128], index: 0, kind: input, shape index: {}]   ;;  %s360_s1 = inlined_call_operand.hbm [shape: bf16[128,128], index: 1, kind: input, shape index: {}]   ;;  %s361_s2 = inlined_call_operand.vmem [shape: f32[16,1], index: 2, kind: input, shape index: {}]   ;;  %s362_s3 = inlined_call_operand.vmem [shape: f32[1,128], index: 3, kind: input, shape index: {}]   ;;  %s363_s4 = inlined_call_operand.hbm [shape: f32[16,128], index: 4, kind: output, shape index: {}]  }
   0x1   :  { %10 = vsyncpa [#allocation5], 0  ;;  %s307_s15 = smov [#allocation3]  }
   0x2   :  { %s18_s16 = sshll.u32 %s307_s15, 4  ;;  %s19_s16 = int_to_ptr.vmem [resolvable:$true] %s18_s16 }
   0x3   :  { %s271_s17 = scalar_lea.vmem %s19_s16, 1024  ;;  %p276_p1 = scmp.lt.s32.totalorder %s19_s16, %s19_s16 }
   0x4   :  { %p272_p0 = scmp.ne.s32.totalorder %s19_s16, %s271_s17  ;;  %p277_p2 = scmp.lt.s32.totalorder %s271_s17, %s271_s17 }
   0x6   :  { %p278_p3 = por %p277_p2, %p276_p1 }
   0x8   :  { %p279_p4 = pnand %p278_p3, %p272_p0 }
   0xa   :  { %282 = shalt.err (!%p279_p4)
}
   0xb   :  { %s308_s18 = smov 64   ;;  %s309_s19 = smov 4  }
   0xc   :  { %24 = dma.hbm_to_vmem [thread:$0]  %s360_s1, 1024, %s19_s16, [#allocation4], %s308_s18, %s308_s18, %s309_s19  }
   0xd   :  { %303 = dma.done.wait [#allocation4], 1024  }
   0xe   :  { %304 = vsyncadd [#allocation4], 4294966272  ;;  %v310_v0 = vmov 0.0   ;;  %vm311_vm0 = vmmov 0   ;;  %v312_v1 = vmov 0   ;;  %v254_v2 = vld [vmem:[#allocation3 + $0x38] sm:$0xff]  }
   0xf   :  { %224 = vmatprep.subr.bf16.mxu0 %v310_v0  ;;  %240 = vmatprep.mubr.msk.bf16.mxu0 %vm311_vm0, %v310_v0  ;;  %v255_v3 = vld [vmem:[#allocation3 + $0x30] sm:$0xff]   ;;  %v163_v4 = vld [vmem:[%s361_s2] sm:$0xff]  ;;  %v164_v5 = vld [vmem:[%s361_s2 + $0x8] sm:$0xff]  ;;  %s313_s28 = smov [#allocation6]  }
  0x10   :  { %253 = vset.pattern.permute.xlu0 %v312_v1  ;;  %225 = vmatpush3.bf16.xpose.msra.mxu0 %v254_v2  ;;  %v256_v6 = vld [vmem:[#allocation3 + $0x28] sm:$0xff]   ;;  %v257_v7 = vld [vmem:[#allocation3 + $0x20] sm:$0xff]   ;;  %v258_v8 = vld [vmem:[#allocation3 + $0x18] sm:$0xff]   ;;  %s193_s29 = sshll.u32 %s313_s28, 4  ;;  %s194_s29 = int_to_ptr.vmem [resolvable:$true] %s193_s29 }
  0x11   :  { %226 = vmatprep.subr.bf16.mxu0 %v310_v0  ;;  %167 = vperm.xlu0 %253, %v163_v4   ;;  %v259_v9 = vld [vmem:[#allocation3 + $0x10] sm:$0xff]   ;;  %v260_v10 = vld [vmem:[#allocation3 + $0x8] sm:$0xff]   ;;  %v261_v11 = vld [vmem:[#allocation3] sm:$0xff]   ;;  %p288_p6 = scmp.lt.s32.totalorder %s194_s29, %s194_s29 }
  0x12   :  { %v262_v12 = vld [vmem:[%s359_s0] sm:$0xff]   ;;  %s283_s0 = scalar_lea.vmem %s194_s29, 256 }
  0x13   :  { %v214_v15 = vld [vmem:[%s362_s3] ss:$0 sm:$0xff]  ;;  %p284_p5 = scmp.ne.s32.totalorder %s194_s29, %s283_s0  ;;  %p289_p7 = scmp.lt.s32.totalorder %s283_s0, %s283_s0 }
  0x15   :  { %172 = vperm.xlu0 %253, %v164_v5   ;;  %p290_p8 = por %p289_p7, %p288_p6 }
  0x17   :  { %p291_p9 = pnand %p290_p8, %p284_p5 }
  0x18   :  { %227 = vmatpush3.bf16.xpose.msra.mxu0 %v255_v3 }
  0x19   :  { %228 = vmatprep.subr.bf16.mxu0 %v310_v0 }
  0x20   :  { %229 = vmatpush3.bf16.xpose.msra.mxu0 %v256_v6 }
  0x21   :  { %230 = vmatprep.subr.bf16.mxu0 %v310_v0 }
  0x28   :  { %231 = vmatpush3.bf16.xpose.msra.mxu0 %v257_v7 }
  0x29   :  { %232 = vmatprep.subr.bf16.mxu0 %v310_v0 }
  0x30   :  { %233 = vmatpush3.bf16.xpose.msra.mxu0 %v258_v8 }
  0x31   :  { %234 = vmatprep.subr.bf16.mxu0 %v310_v0 }
  0x38   :  { %235 = vmatpush3.bf16.xpose.msra.mxu0 %v259_v9 }
  0x39   :  { %236 = vmatprep.subr.bf16.mxu0 %v310_v0 }
  0x40   :  { %237 = vmatpush3.bf16.xpose.msra.mxu0 %v260_v10 }
  0x41   :  { %238 = vmatprep.subr.bf16.mxu0 %v310_v0 }
  0x48   :  { %239 = vmatpush3.bf16.xpose.msra.mxu0 %v261_v11 }
  0x4f   :  { %241 = vmatmul.mubr.bf16.vlgmr.msra.gmra.mxu0 %v262_v12 }
  0x8c   :  { %v168_v13 = vpop.permute.xlu0 %167 }
  0x90   :  { %v173_v19 = vpop.permute.xlu0 %172 }
 0x10f   :  { %v147_v14 = vpop.f32.mrf.mxu0 }
 0x110   :  { %v175_v16 = vmul.f32 %v168_v13, %v147_v14 }
 0x111   :  { %v242_v17 = vpop.f32.mrf.mxu0 }
 0x112   :  { %v184_v18 = vmul.f32 %v214_v15, %v175_v16 }
 0x113   :  { %v150_v20 = vpop.f32.mrf.mxu0 }
 0x114   :  { %186 = vst [vmem:[#allocation6] sm:$0xff] %v184_v18  ;;  %v176_v21 = vmul.f32 %v173_v19, %v150_v20 }
 0x115   :  { %v243_v22 = vpop.f32.mrf.mxu0 }
 0x116   :  { %v185_v23 = vmul.f32 %v214_v15, %v176_v21 }
 0x118   :  { %187 = vst [vmem:[#allocation6 + $0x8] sm:$0xff] %v185_v23 }
 0x119   :  { %294 = shalt.err (!%p291_p9)
}
 0x11a   :  { %s314_s3 = smov 128   ;;  %s315_s30 = smov 8  }
 0x11b   :  { %199 = dma.vmem_to_hbm [thread:$0]  %s194_s29, 256, %s363_s4, [#allocation5], %s314_s3, %s314_s3, %s315_s30  }
 0x11c   :  { %305 = dma.done.wait [#allocation5], 256  }
 0x11d   :  { %306 = vsyncadd [#allocation5], 4294967040 }
 0x11e   :  { %203 = vsyncpa [#allocation4], 1 }
 0x11f   :  { %204 = vsyncpa [#allocation5], 1 }

</bundles_post_ra>
